<compile_context>
chip_gen: v7x
topology: tpu7x:2x2x1
jax: 0.10.0
libtpu: 0.0.40
codegen_flags: <defaults>
</compile_context>

<pallas_src>
import numpy as np
import jax
import jax.numpy as jnp
from jax.experimental import pallas as pl
from jax.experimental.pallas import tpu as pltpu


def _make_wave1d_kernel(dt, A0, A1, A2):
    dt, A0, A1, A2 = float(dt), float(A0), float(A1), float(A2)

    def kernel(srcs_ref, H_ref, W_ref, srcvec_ref, bmask_ref, out_ref):
        nx = H_ref.shape[2]
        T = srcs_ref.shape[0]

        # Loop-invariant constants: load once, keep live across the loop.
        W0 = W_ref[0:1, :]   # neighbor offset -2 (right boundary one-sided)
        W1 = W_ref[1:2, :]   # neighbor offset -1 (interior left)
        W2 = W_ref[2:3, :]   # neighbor offset  0
        W3 = W_ref[3:4, :]   # neighbor offset +1 (interior right)
        W4 = W_ref[4:5, :]   # neighbor offset +2 (left boundary one-sided)
        src_vec = srcvec_ref[...]          # (1, nx) one-hot * fscale
        bmask = bmask_ref[...]             # (1, nx): 1.0 at columns 0, nx-1
        imask = 1.0 - bmask

        uC = H_ref[0]
        vC = H_ref[1]
        uP = H_ref[2]
        vP = H_ref[3]

        def step(t, carry):
            uC, vC, uP, vP = carry
            f = srcs_ref[t] * src_vec                       # (1, nx)
            w = uC + dt * vC                                # (B, nx)
            # k[i] = sum_off W[off, i] * w[i + off].  The +-1 / +-2 rows are
            # zero at the columns the cyclic roll wraps into, so wrap-around
            # contributes nothing (matches torch.roll semantics + boundary
            # overwrite of the reference).
            k = (W2 * w
                 + W1 * pltpu.roll(w, shift=1, axis=1)        # w[i-1]
                 + W3 * pltpu.roll(w, shift=nx - 1, axis=1)   # w[i+1]
                 + W0 * pltpu.roll(w, shift=2, axis=1)        # w[i-2]
                 + W4 * pltpu.roll(w, shift=nx - 2, axis=1))  # w[i+2]
            vN = A0 * (dt * (f + k) + A1 * vC + A2 * vP)
            vN = imask * vN + bmask * k      # vN[0] = k[0], vN[-1] = k[-1]
            uN = A0 * (dt * vN + A1 * uC + A2 * uP)
            return (uN, vN, uC, vC)

        uN, vN, uL, vL = jax.lax.fori_loop(0, T, step, (uC, vC, uP, vP))
        out_ref[0] = uN
        out_ref[1] = vN
        out_ref[2] = uL
        out_ref[3] = vL

    return kernel


class Wave1DPGNNCellPallas:
    """JAX/Pallas equivalent of Wave1D_PGNNcell (parameter setup on the host)."""

    def __init__(self, C, config):
        nx = int(config['nx'])
        dx = float(config['dx'])
        self.dt = float(config['dt'])
        self.nx = nx
        self.fixedBC = config['bc'] == 'fixed'

        C = np.asarray(C, np.float32)

        # ---- wave_matrices ----
        spcCtr = np.array([1.0, -2.0, 1.0], np.float32)
        spcFwd = np.array([-1.5, 2.0, -0.5], np.float32)
        Cwgt = (C / dx).astype(np.float32) ** 2
        Kxx = np.repeat(spcCtr, nx).reshape(3, nx).astype(np.float32) * Cwgt
        Kxx[:, 0] = 0.0
        Kxx[:, -1] = 0.0
        Kx = np.zeros((3, nx), np.float32)
        if not self.fixedBC:
            Kx[:, 0] = spcFwd * C[0] / dx
            Kx[:, -1] = spcFwd[::-1] * C[-1] / dx
        timBak = np.array([1.5, -2.0, 0.5], np.float32)
        A = np.array([1.0 / timBak[0], -timBak[1], -timBak[2]], np.float32)

        # ---- folded 5-row shift table: k[i] = sum_off W[off+2, i] * w[i+off] ----
        W = np.zeros((5, nx), np.float32)
        W[1, :] = Kxx[0, :]          # offset -1
        W[2, :] = Kxx[1, :]          # offset  0
        W[3, :] = Kxx[2, :]          # offset +1
        # left boundary one-sided stencil (offsets 0, +1, +2 at column 0)
        W[2, 0] += Kx[0, 0]
        W[3, 0] += Kx[1, 0]
        W[4, 0] += Kx[2, 0]
        # right boundary one-sided stencil (offsets -2, -1, 0 at column nx-1)
        W[0, nx - 1] += Kx[0, -1]
        W[1, nx - 1] += Kx[1, -1]
        W[2, nx - 1] += Kx[2, -1]

        # ---- Point_Source ----
        xbgn, _ = config['x_limits']
        xpos = float(config['x_s']) - float(xbgn)
        ixs = max(1, int(np.ceil(xpos / dx)))
        frac = ixs - xpos / dx
        frac = 0.0 if ixs == 1 else frac
        frac = 1.0 if ixs == nx - 1 else frac
        fscale = (C ** 2 / dx).astype(np.float32)
        src_vec = np.zeros((1, nx), np.float32)
        src_vec[0, ixs] = (1.0 - frac) * fscale[ixs]
        src_vec[0, ixs - 1] = frac * fscale[ixs - 1]

        bmask = np.zeros((1, nx), np.float32)
        bmask[0, 0] = 1.0
        bmask[0, -1] = 1.0

        # kernel-side constants
        self.W = jnp.asarray(W)
        self.src_vec = jnp.asarray(src_vec)
        self.bmask = jnp.asarray(bmask)
        self._kernel = _make_wave1d_kernel(self.dt, A[0], A[1], A[2])

        # reference-side constants
        self.A = A
        self.Kx = jnp.asarray(Kx)
        self.Kxx = jnp.asarray(Kxx)
        self.fscale = jnp.asarray(fscale)
        self.ixs = int(ixs)
        self.frac = float(frac)

    def run(self, H, srcs):
        """Fused simulation: H is (4, B, nx) [uC, vC, uP, vP] per shot,
        srcs is (T,) source amplitudes.  Returns the state after T steps."""
        H = jnp.asarray(H, jnp.float32)
        srcs = jnp.atleast_1d(jnp.asarray(srcs, jnp.float32))
        nx = self.nx
        assert H.ndim == 3 and H.shape[0] == 4 and H.shape[2] == nx
        B = H.shape[1]
        bblk = 8 if (B % 8 == 0) else B      # fill sublanes when possible
        grid = (B // bblk,)

        return pl.pallas_call(
            self._kernel,
            out_shape=jax.ShapeDtypeStruct((4, B, nx), jnp.float32),
            grid=grid,
            in_specs=[
                # per-step source amplitudes, whole array in SMEM
                pl.BlockSpec(memory_space=pltpu.MemorySpace.SMEM),
                # wave state, blocked over the shot (sublane) axis
                pl.BlockSpec((4, bblk, nx), lambda i: (0, i, 0)),
                # loop-invariant constants (same block for every grid step)
                pl.BlockSpec((5, nx), lambda i: (0, 0)),
                pl.BlockSpec((1, nx), lambda i: (0, 0)),
                pl.BlockSpec((1, nx), lambda i: (0, 0)),
            ],
            out_specs=pl.BlockSpec((4, bblk, nx), lambda i: (0, i, 0)),
            compiler_params=pltpu.CompilerParams(
                dimension_semantics=("parallel",)),
        )(srcs, H, self.W, self.src_vec, self.bmask)

    def __call__(self, H, src):
        """Single time step, identical contract to the PyTorch forward:
        H is (4, nx), src a scalar; returns (4, nx) = [uN, vN, uC, vC]."""
        H = jnp.asarray(H, jnp.float32)
        out = self.run(H[:, None, :], jnp.array([src], jnp.float32))
        return out[:, 0, :]


# ---------------------------------------------------------------------------
# Pure-JAX transcription of the PyTorch forward, for verification.
# ---------------------------------------------------------------------------
def forward_ref(H, src, cell):
    A, Kx, Kxx, dt, nx = cell.A, cell.Kx, cell.Kxx, cell.dt, cell.nx
    uC, vC, uP, vP = H[0], H[1], H[2], H[3]
    f = jnp.zeros(nx, jnp.float32)
    f = f.at[cell.ixs].set((1.0 - cell.frac) * src)
    f = f.at[cell.ixs - 1].set(cell.frac * src)
    f = f * cell.fscale
    k = jnp.sum(jnp.stack([jnp.roll(uC, 1), uC, jnp.roll(uC, -1)]) * Kxx, axis=0)
    k = k + dt * jnp.sum(jnp.stack([jnp.roll(vC, 1), vC, jnp.roll(vC, -1)]) * Kxx,
                         axis=0)
    if cell.fixedBC:
        kl = jnp.float32(0.0)
        kr = jnp.float32(0.0)
    else:
        kl = jnp.sum(uC[:3] * Kx[:, 0]) + dt * jnp.sum(vC[:3] * Kx[:, 0])
        kr = jnp.sum(uC[-3:] * Kx[:, -1]) + dt * jnp.sum(vC[-3:] * Kx[:, -1])
    k = k.at[0].set(kl).at[-1].set(kr)
    vN = A[0] * (dt * (f + k) + A[1] * vC + A[2] * vP)
    vN = vN.at[0].set(k[0]).at[-1].set(k[-1])
    uN = A[0] * (dt * vN + A[1] * uC + A[2] * uP)
    return jnp.stack([uN, vN, uC, vC])


def run_ref(H_batched, srcs, cell):
    outs = []
    for b in range(H_batched.shape[1]):
        Hb = H_batched[:, b, :]
        for t in range(srcs.shape[0]):
            Hb = forward_ref(Hb, float(srcs[t]), cell)
        outs.append(Hb)
    return jnp.stack(outs, axis=1)


if __name__ == "__main__":
    nx = 128
    dx = 1.0
    dt = 0.25
    config = dict(dt=dt, dx=dx, nx=nx, bc='free',
                  x_limits=(0.0, nx * dx), x_s=50.3)

    key = jax.random.PRNGKey(0)
    kC, kH1, kH2 = jax.random.split(key, 3)
    C = 1.0 + 0.2 * jax.random.uniform(kC, (nx,), jnp.float32)   # velocity model

    cell = Wave1DPGNNCellPallas(C, config)

    # --- single step (exact contract of the PyTorch forward) ---
    H0 = jax.random.normal(kH1, (4, nx), jnp.float32)            # [uC, vC, uP, vP]
    src0 = 0.7
    out1 = jax.block_until_ready(cell(H0, src0))
    ref1 = forward_ref(H0, src0, cell)
    np.testing.assert_allclose(np.asarray(out1), np.asarray(ref1),
                               rtol=1e-4, atol=1e-4)

    # --- fused T-step, 8 shots batched along the sublane axis ---
    B, T = 8, 16
    Hb = 0.1 * jax.random.normal(kH2, (4, B, nx), jnp.float32)
    srcs = jnp.sin(0.3 * jnp.arange(T, dtype=jnp.float32))
    outT = jax.block_until_ready(cell.run(Hb, srcs))
    refT = run_ref(Hb, srcs, cell)
    np.testing.assert_allclose(np.asarray(outT), np.asarray(refT),
                               rtol=1e-4, atol=1e-4)

    print("KERNEL_OK")
</pallas_src>

<mosaic_0001>
module attributes {stable_mosaic.version = 11 : i64} {
  func.func @kernel(%arg0: i32, %arg1: memref<1xf32, #tpu.memory_space<smem>>, %arg2: memref<4x1x128xf32, #tpu.memory_space<vmem>>, %arg3: memref<5x128xf32, #tpu.memory_space<vmem>>, %arg4: memref<1x128xf32, #tpu.memory_space<vmem>>, %arg5: memref<1x128xf32, #tpu.memory_space<vmem>>, %arg6: memref<4x1x128xf32, #tpu.memory_space<vmem>>) attributes {dimension_semantics = [#tpu.dimension_semantics<parallel>], iteration_bounds = array<i64: 1>, scalar_prefetch = 0 : i64, scratch_operands = 0 : i64, tpu.core_type = #tpu.core_type<tc>, window_params = [{transform_indices = @transform_0, window_bounds = array<i64: 1>}, {transform_indices = @transform_1, window_bounds = array<i64: 4, 1, 128>}, {pipeline_mode = #tpu.pipeline_mode<synchronous>, transform_indices = @transform_2, window_bounds = array<i64: 5, 128>}, {pipeline_mode = #tpu.pipeline_mode<synchronous>, transform_indices = @transform_3, window_bounds = array<i64: 1, 128>}, {pipeline_mode = #tpu.pipeline_mode<synchronous>, transform_indices = @transform_4, window_bounds = array<i64: 1, 128>}, {transform_indices = @transform_5, window_bounds = array<i64: 4, 1, 128>}]} {
    %c0 = arith.constant 0 : index
    %c0_0 = arith.constant 0 : index
    %0 = vector.load %arg3[%c0, %c0_0] : memref<5x128xf32, #tpu.memory_space<vmem>>, vector<1x128xf32>
    %c1 = arith.constant 1 : index
    %c0_1 = arith.constant 0 : index
    %1 = vector.load %arg3[%c1, %c0_1] : memref<5x128xf32, #tpu.memory_space<vmem>>, vector<1x128xf32>
    %c2 = arith.constant 2 : index
    %c0_2 = arith.constant 0 : index
    %2 = vector.load %arg3[%c2, %c0_2] : memref<5x128xf32, #tpu.memory_space<vmem>>, vector<1x128xf32>
    %c3 = arith.constant 3 : index
    %c0_3 = arith.constant 0 : index
    %3 = vector.load %arg3[%c3, %c0_3] : memref<5x128xf32, #tpu.memory_space<vmem>>, vector<1x128xf32>
    %c4 = arith.constant 4 : index
    %c0_4 = arith.constant 0 : index
    %4 = vector.load %arg3[%c4, %c0_4] : memref<5x128xf32, #tpu.memory_space<vmem>>, vector<1x128xf32>
    %c0_5 = arith.constant 0 : index
    %c0_6 = arith.constant 0 : index
    %5 = vector.load %arg4[%c0_5, %c0_6] : memref<1x128xf32, #tpu.memory_space<vmem>>, vector<1x128xf32>
    %c0_7 = arith.constant 0 : index
    %c0_8 = arith.constant 0 : index
    %6 = vector.load %arg5[%c0_7, %c0_8] : memref<1x128xf32, #tpu.memory_space<vmem>>, vector<1x128xf32>
    %cst = arith.constant 1.000000e+00 : f32
    %7 = vector.broadcast %cst : f32 to vector<1x128xf32>
    %8 = arith.subf %7, %6 : vector<1x128xf32>
    %c0_9 = arith.constant 0 : index
    %c0_10 = arith.constant 0 : index
    %c0_11 = arith.constant 0 : index
    %9 = vector.load %arg2[%c0_9, %c0_10, %c0_11] : memref<4x1x128xf32, #tpu.memory_space<vmem>>, vector<1x1x128xf32>
    %10 = vector.shape_cast %9 : vector<1x1x128xf32> to vector<1x128xf32>
    %c1_12 = arith.constant 1 : index
    %c0_13 = arith.constant 0 : index
    %c0_14 = arith.constant 0 : index
    %11 = vector.load %arg2[%c1_12, %c0_13, %c0_14] : memref<4x1x128xf32, #tpu.memory_space<vmem>>, vector<1x1x128xf32>
    %12 = vector.shape_cast %11 : vector<1x1x128xf32> to vector<1x128xf32>
    %c2_15 = arith.constant 2 : index
    %c0_16 = arith.constant 0 : index
    %c0_17 = arith.constant 0 : index
    %13 = vector.load %arg2[%c2_15, %c0_16, %c0_17] : memref<4x1x128xf32, #tpu.memory_space<vmem>>, vector<1x1x128xf32>
    %14 = vector.shape_cast %13 : vector<1x1x128xf32> to vector<1x128xf32>
    %c3_18 = arith.constant 3 : index
    %c0_19 = arith.constant 0 : index
    %c0_20 = arith.constant 0 : index
    %15 = vector.load %arg2[%c3_18, %c0_19, %c0_20] : memref<4x1x128xf32, #tpu.memory_space<vmem>>, vector<1x1x128xf32>
    %16 = vector.shape_cast %15 : vector<1x1x128xf32> to vector<1x128xf32>
    %c0_i32 = arith.constant 0 : i32
    %17 = arith.index_cast %c0_i32 : i32 to index
    %18 = memref.load %arg1[%17] : memref<1xf32, #tpu.memory_space<smem>>
    %19 = vector.broadcast %18 : f32 to vector<1x128xf32>
    %20 = arith.mulf %19, %5 : vector<1x128xf32>
    %cst_21 = arith.constant 2.500000e-01 : f32
    %21 = vector.broadcast %cst_21 : f32 to vector<1x128xf32>
    %22 = arith.mulf %21, %12 : vector<1x128xf32>
    %23 = arith.addf %10, %22 : vector<1x128xf32>
    %24 = arith.mulf %2, %23 : vector<1x128xf32>
    %c1_i32 = arith.constant 1 : i32
    %25 = tpu.dynamic_rotate %23 by %c1_i32 dim 1 : vector<1x128xf32>, i32 -> vector<1x128xf32>
    %26 = arith.mulf %1, %25 : vector<1x128xf32>
    %27 = arith.addf %24, %26 : vector<1x128xf32>
    %c127_i32 = arith.constant 127 : i32
    %28 = tpu.dynamic_rotate %23 by %c127_i32 dim 1 : vector<1x128xf32>, i32 -> vector<1x128xf32>
    %29 = arith.mulf %3, %28 : vector<1x128xf32>
    %30 = arith.addf %27, %29 : vector<1x128xf32>
    %c2_i32 = arith.constant 2 : i32
    %31 = tpu.dynamic_rotate %23 by %c2_i32 dim 1 : vector<1x128xf32>, i32 -> vector<1x128xf32>
    %32 = arith.mulf %0, %31 : vector<1x128xf32>
    %33 = arith.addf %30, %32 : vector<1x128xf32>
    %c126_i32 = arith.constant 126 : i32
    %34 = tpu.dynamic_rotate %23 by %c126_i32 dim 1 : vector<1x128xf32>, i32 -> vector<1x128xf32>
    %35 = arith.mulf %4, %34 : vector<1x128xf32>
    %36 = arith.addf %33, %35 : vector<1x128xf32>
    %37 = arith.addf %20, %36 : vector<1x128xf32>
    %cst_22 = arith.constant 2.500000e-01 : f32
    %38 = vector.broadcast %cst_22 : f32 to vector<1x128xf32>
    %39 = arith.mulf %38, %37 : vector<1x128xf32>
    %cst_23 = arith.constant 2.000000e+00 : f32
    %40 = vector.broadcast %cst_23 : f32 to vector<1x128xf32>
    %41 = arith.mulf %40, %12 : vector<1x128xf32>
    %42 = arith.addf %39, %41 : vector<1x128xf32>
    %cst_24 = arith.constant -5.000000e-01 : f32
    %43 = vector.broadcast %cst_24 : f32 to vector<1x128xf32>
    %44 = arith.mulf %43, %16 : vector<1x128xf32>
    %45 = arith.addf %42, %44 : vector<1x128xf32>
    %cst_25 = arith.constant 0.666666686 : f32
    %46 = vector.broadcast %cst_25 : f32 to vector<1x128xf32>
    %47 = arith.mulf %46, %45 : vector<1x128xf32>
    %48 = arith.mulf %8, %47 : vector<1x128xf32>
    %49 = arith.mulf %6, %36 : vector<1x128xf32>
    %50 = arith.addf %48, %49 : vector<1x128xf32>
    %cst_26 = arith.constant 2.500000e-01 : f32
    %51 = vector.broadcast %cst_26 : f32 to vector<1x128xf32>
    %52 = arith.mulf %51, %50 : vector<1x128xf32>
    %cst_27 = arith.constant 2.000000e+00 : f32
    %53 = vector.broadcast %cst_27 : f32 to vector<1x128xf32>
    %54 = arith.mulf %53, %10 : vector<1x128xf32>
    %55 = arith.addf %52, %54 : vector<1x128xf32>
    %cst_28 = arith.constant -5.000000e-01 : f32
    %56 = vector.broadcast %cst_28 : f32 to vector<1x128xf32>
    %57 = arith.mulf %56, %14 : vector<1x128xf32>
    %58 = arith.addf %55, %57 : vector<1x128xf32>
    %cst_29 = arith.constant 0.666666686 : f32
    %59 = vector.broadcast %cst_29 : f32 to vector<1x128xf32>
    %60 = arith.mulf %59, %58 : vector<1x128xf32>
    %c1_i32_30 = arith.constant 1 : i32
    %c0_31 = arith.constant 0 : index
    %c0_32 = arith.constant 0 : index
    %c0_33 = arith.constant 0 : index
    %61 = vector.load %arg6[%c0_31, %c0_32, %c0_33] : memref<4x1x128xf32, #tpu.memory_space<vmem>>, vector<1x1x128xf32>
    %62 = vector.shape_cast %61 : vector<1x1x128xf32> to vector<1x128xf32>
    %63 = vector.shape_cast %60 : vector<1x128xf32> to vector<1x1x128xf32>
    tpu.vector_store %arg6[%c0_31, %c0_32, %c0_33], %63 {strides = array<i32>} : memref<4x1x128xf32, #tpu.memory_space<vmem>>, vector<1x1x128xf32>,
    %c1_34 = arith.constant 1 : index
    %c0_35 = arith.constant 0 : index
    %c0_36 = arith.constant 0 : index
    %64 = vector.load %arg6[%c1_34, %c0_35, %c0_36] : memref<4x1x128xf32, #tpu.memory_space<vmem>>, vector<1x1x128xf32>
    %65 = vector.shape_cast %64 : vector<1x1x128xf32> to vector<1x128xf32>
    %66 = vector.shape_cast %50 : vector<1x128xf32> to vector<1x1x128xf32>
    tpu.vector_store %arg6[%c1_34, %c0_35, %c0_36], %66 {strides = array<i32>} : memref<4x1x128xf32, #tpu.memory_space<vmem>>, vector<1x1x128xf32>,
    %c2_37 = arith.constant 2 : index
    %c0_38 = arith.constant 0 : index
    %c0_39 = arith.constant 0 : index
    %67 = vector.load %arg6[%c2_37, %c0_38, %c0_39] : memref<4x1x128xf32, #tpu.memory_space<vmem>>, vector<1x1x128xf32>
    %68 = vector.shape_cast %67 : vector<1x1x128xf32> to vector<1x128xf32>
    %69 = vector.shape_cast %10 : vector<1x128xf32> to vector<1x1x128xf32>
    tpu.vector_store %arg6[%c2_37, %c0_38, %c0_39], %69 {strides = array<i32>} : memref<4x1x128xf32, #tpu.memory_space<vmem>>, vector<1x1x128xf32>,
    %c3_40 = arith.constant 3 : index
    %c0_41 = arith.constant 0 : index
    %c0_42 = arith.constant 0 : index
    %70 = vector.load %arg6[%c3_40, %c0_41, %c0_42] : memref<4x1x128xf32, #tpu.memory_space<vmem>>, vector<1x1x128xf32>
    %71 = vector.shape_cast %70 : vector<1x1x128xf32> to vector<1x128xf32>
    %72 = vector.shape_cast %12 : vector<1x128xf32> to vector<1x1x128xf32>
    tpu.vector_store %arg6[%c3_40, %c0_41, %c0_42], %72 {strides = array<i32>} : memref<4x1x128xf32, #tpu.memory_space<vmem>>, vector<1x1x128xf32>,
    return
  }
  func.func @transform_0(%arg0: i32) -> i32 {
    %c0_i32 = arith.constant 0 : i32
    %c0_i32_0 = arith.constant 0 : i32
    return %c0_i32 : i32
  }
  func.func @transform_1(%arg0: i32) -> (i32, i32, i32) {
    %c0_i32 = arith.constant 0 : i32
    %c0_i32_0 = arith.constant 0 : i32
    %c0_i32_1 = arith.constant 0 : i32
    return %c0_i32, %arg0, %c0_i32_0 : i32, i32, i32
  }
  func.func @transform_2(%arg0: i32) -> (i32, i32) {
    %c0_i32 = arith.constant 0 : i32
    %c0_i32_0 = arith.constant 0 : i32
    %c0_i32_1 = arith.constant 0 : i32
    return %c0_i32, %c0_i32_0 : i32, i32
  }
  func.func @transform_3(%arg0: i32) -> (i32, i32) {
    %c0_i32 = arith.constant 0 : i32
    %c0_i32_0 = arith.constant 0 : i32
    %c0_i32_1 = arith.constant 0 : i32
    return %c0_i32, %c0_i32_0 : i32, i32
  }
  func.func @transform_4(%arg0: i32) -> (i32, i32) {
    %c0_i32 = arith.constant 0 : i32
    %c0_i32_0 = arith.constant 0 : i32
    %c0_i32_1 = arith.constant 0 : i32
    return %c0_i32, %c0_i32_0 : i32, i32
  }
  func.func @transform_5(%arg0: i32) -> (i32, i32, i32) {
    %c0_i32 = arith.constant 0 : i32
    %c0_i32_0 = arith.constant 0 : i32
    %c0_i32_1 = arith.constant 0 : i32
    return %c0_i32, %arg0, %c0_i32_0 : i32, i32, i32
  }
}

</mosaic_0001>

<bundles_post_ra>
// kernel: tpu_custom_call.1
= control target key start
LH: loop header
LB: loop body
LE: loop exit
PB: predicated region body
PF: predicated region fallthrough
CT: control target
= control target key end

     0   :  { %11 = vsyncpa [#allocation4], 0  ;;  %s296_s0 = inlined_call_operand.<no memory space> [shape: f32[1], index: 0, kind: input, shape index: {}]   ;;  %s297_s1 = inlined_call_operand.hbm [shape: f32[4,1,128], index: 1, kind: input, shape index: {}]   ;;  %s298_s2 = inlined_call_operand.hbm [shape: f32[5,128], index: 2, kind: input, shape index: {}]   ;;  %s299_s3 = inlined_call_operand.vmem [shape: f32[1,128], index: 3, kind: input, shape index: {}]   ;;  %s300_s4 = inlined_call_operand.vmem [shape: f32[1,128], index: 4, kind: input, shape index: {}]   ;;  %s301_s5 = inlined_call_operand.hbm [shape: f32[4,1,128], index: 5, kind: output, shape index: {}]  }
   0x1   :  { %12 = vsyncpa [#allocation7], 0 }
   0x2   :  { %13 = vsyncpa [#allocation5], 0  ;;  %s206_s18 = smov [#allocation3]   ;;  %s134_s22 = scalar_lea.hbm %s297_s1, 64 }
   0x3   :  { %s21_s19 = sshll.u32 %s206_s18, 4  ;;  %p135_p0 = scmp.ne.s32.totalorder %s297_s1, %s134_s22  ;;  %s22_s19 = int_to_ptr.vmem [resolvable:$true] %s21_s19 }
   0x4   :  { %p138_p1 = scmp.lt.u32.totalorder %s134_s22, %s297_s1 }
   0x6   :  { %p140_p2 = pnand %p138_p1, %p135_p0 }
   0x8   :  { %143 = shalt.err (!%p140_p2)
}
   0x9   :  { %s144_s27 = scalar_lea.vmem %s22_s19, 64  ;;  %p149_p4 = scmp.lt.s32.totalorder %s22_s19, %s22_s19 }
   0xa   :  { %p145_p3 = scmp.ne.s32.totalorder %s22_s19, %s144_s27  ;;  %p150_p5 = scmp.lt.s32.totalorder %s144_s27, %s144_s27 }
   0xc   :  { %p151_p6 = por %p150_p5, %p149_p4 }
   0xe   :  { %p152_p7 = pnand %p151_p6, %p145_p3 }
  0x10   :  { %155 = shalt.err (!%p152_p7)
}
  0x11   :  { %s207_s28 = smov 16   ;;  %s208_s29 = smov 1  }
  0x12   :  { %27 = dma.hbm_to_vmem [thread:$0]  %s297_s1, 64, %s22_s19, [#allocation4], %s207_s28, %s207_s28, %s208_s29  }
  0x13   :  { %s209_s7 = smov [#allocation6]   ;;  %s156_s11 = scalar_lea.hbm %s298_s2, 128 }
  0x14   :  { %s34_s8 = sshll.u32 %s209_s7, 4  ;;  %p157_p8 = scmp.ne.s32.totalorder %s298_s2, %s156_s11  ;;  %s35_s8 = int_to_ptr.vmem [resolvable:$true] %s34_s8 }
  0x15   :  { %p160_p9 = scmp.lt.u32.totalorder %s156_s11, %s298_s2 }
  0x17   :  { %p162_p10 = pnand %p160_p9, %p157_p8 }
  0x19   :  { %165 = shalt.err (!%p162_p10)
}
  0x1a   :  { %s166_s16 = scalar_lea.vmem %s35_s8, 128  ;;  %p171_p12 = scmp.lt.s32.totalorder %s35_s8, %s35_s8 }
  0x1b   :  { %p167_p11 = scmp.ne.s32.totalorder %s35_s8, %s166_s16  ;;  %p172_p13 = scmp.lt.s32.totalorder %s166_s16, %s166_s16 }
  0x1d   :  { %p173_p0 = por %p172_p13, %p171_p12 }
  0x1f   :  { %p174_p1 = pnand %p173_p0, %p167_p11 }
  0x21   :  { %177 = shalt.err (!%p174_p1)
}
  0x22   :  { %37 = dma.hbm_to_vmem [thread:$0]  %s298_s2, 128, %s35_s8, [#allocation7]  }
  0x23   :  { %200 = dma.done.wait [#allocation4], 64  }
  0x24   :  { %201 = vsyncadd [#allocation4], 4294967232 }
  0x25   :  { %202 = dma.done.wait [#allocation7], 128  }
  0x26   :  { %203 = vsyncadd [#allocation7], 4294967168  ;;  %v56_v0 = vld [vmem:[#allocation3] sm:$0x1]  ;;  %v58_v1 = vld [vmem:[#allocation3 + $0x1] sm:$0x1]  ;;  %v64_v17 = vstv %s296_s0 }
  0x27   :  { %v66_v2 = vmul.f32 0.25, %v58_v1  ;;  %105 = vst [vmem:[#allocation8 + $0x2] sm:$0x1] %v56_v0  ;;  %107 = vst [vmem:[#allocation8 + $0x3] sm:$0x1] %v58_v1  ;;  %s210_s18 = smov 2  }
  0x28   :  { %s211_s19 = smov 127   ;;  %s212_s20 = smov 126   ;;  %v49_v4 = vld [vmem:[#allocation6 + $0x1] sm:$0x1]  ;;  %v50_v5 = vld [vmem:[#allocation6 + $0x2] sm:$0x1] }
  0x29   :  { %v67_v3 = vadd.f32 %v66_v2, %v56_v0  ;;  %v51_v10 = vld [vmem:[#allocation6 + $0x3] sm:$0x1]  ;;  %v48_v11 = vld [vmem:[#allocation6] sm:$0x1]  ;;  %v52_v14 = vld [vmem:[#allocation6 + $0x4] sm:$0x1] }
  0x2a   :  { %v53_v18 = vld [vmem:[%s299_s3] sm:$0x1]  ;;  %v62_v25 = vld [vmem:[#allocation3 + $0x3] sm:$0x1]  ;;  %v87_v26 = vmul.f32 2.0, %v58_v1  ;;  %v96_v38 = vmul.f32 2.0, %v56_v0 }
  0x2b   :  { %69 = vrot.lane.b32.xlu0 %v67_v3, %s208_s29  ;;  %77 = vrot.lane.b32.xlu1 %v67_v3, %s210_s18  ;;  %v68_v8 = vmul.f32 %v67_v3, %v50_v5  ;;  %v65_v22 = vmul.f32 %v64_v17, %v53_v18  ;;  %v89_v28 = vmul.f32 -0.5, %v62_v25  ;;  %v54_v31 = vld [vmem:[%s300_s4] sm:$0x1]  ;;  %v60_v37 = vld [vmem:[#allocation3 + $0x2] sm:$0x1]  ;;  %s213_s0 = smov [#allocation8]  }
  0x2c   :  { %v55_v32 = vsub.f32 1.0, %v54_v31  ;;  %v98_v41 = vmul.f32 -0.5, %v60_v37  ;;  %s113_s3 = sshll.u32 %s213_s0, 4  ;;  %s114_s3 = int_to_ptr.vmem [resolvable:$true] %s113_s3 }
  0x2d   :  { %s178_s26 = scalar_lea.vmem %s114_s3, 64  ;;  %p183_p3 = scmp.lt.s32.totalorder %s114_s3, %s114_s3 }
  0x2e   :  { %p179_p2 = scmp.ne.s32.totalorder %s114_s3, %s178_s26  ;;  %p184_p4 = scmp.lt.s32.totalorder %s178_s26, %s178_s26 }
  0x2f   :  { %73 = vrot.lane.b32.xlu0 %v67_v3, %s211_s19  ;;  %81 = vrot.lane.b32.xlu1 %v67_v3, %s212_s20 }
  0x30   :  { %p185_p5 = por %p184_p4, %p183_p3 }
  0x32   :  { %p186_p6 = pnand %p185_p5, %p179_p2 }
  0x9d   :  { %v70_v6 = vpop.permute.xlu0 %69  ;;  %v78_v7 = vpop.permute.xlu1 %77 }
  0x9e   :  { %v71_v9 = vmul.f32 %v70_v6, %v49_v4  ;;  %v79_v19 = vmul.f32 %v78_v7, %v48_v11 }
  0xa0   :  { %v72_v15 = vadd.f32 %v71_v9, %v68_v8 }
  0xa1   :  { %v74_v12 = vpop.permute.xlu0 %73  ;;  %v82_v13 = vpop.permute.xlu1 %81 }
  0xa2   :  { %v75_v16 = vmul.f32 %v74_v12, %v51_v10  ;;  %v83_v21 = vmul.f32 %v82_v13, %v52_v14 }
  0xa4   :  { %v76_v20 = vadd.f32 %v75_v16, %v72_v15 }
  0xa6   :  { %v80_v23 = vadd.f32 %v79_v19, %v76_v20 }
  0xa8   :  { %v84_v24 = vadd.f32 %v83_v21, %v80_v23 }
  0xaa   :  { %v85_v27 = vadd.f32 %v84_v24, %v65_v22  ;;  %v93_v36 = vmul.f32 %v84_v24, %v54_v31 }
  0xac   :  { %v86_v29 = vmul.f32 0.25, %v85_v27 }
  0xae   :  { %v88_v30 = vadd.f32 %v87_v26, %v86_v29 }
  0xb0   :  { %v90_v33 = vadd.f32 %v89_v28, %v88_v30 }
  0xb2   :  { %v91_v34 = vmul.f32 0.6666667, %v90_v33 }
  0xb4   :  { %v92_v35 = vmul.f32 %v91_v34, %v55_v32 }
  0xb6   :  { %v94_v39 = vadd.f32 %v93_v36, %v92_v35 }
  0xb8   :  { %v95_v40 = vmul.f32 0.25, %v94_v39  ;;  %103 = vst [vmem:[#allocation8 + $0x1] sm:$0x1] %v94_v39 }
  0xba   :  { %v97_v42 = vadd.f32 %v96_v38, %v95_v40 }
  0xbc   :  { %v99_v43 = vadd.f32 %v98_v41, %v97_v42 }
  0xbe   :  { %v100_v44 = vmul.f32 0.6666667, %v99_v43 }
  0xc0   :  { %101 = vst [vmem:[#allocation8] sm:$0x1] %v100_v44 }
  0xc1   :  { %189 = shalt.err (!%p186_p6)
}
  0xc2   :  { %s190_s30 = scalar_lea.hbm %s301_s5, 64 }
  0xc3   :  { %p191_p7 = scmp.ne.s32.totalorder %s301_s5, %s190_s30  ;;  %p194_p8 = scmp.lt.u32.totalorder %s190_s30, %s301_s5 }
  0xc5   :  { %p196_p9 = pnand %p194_p8, %p191_p7 }
  0xc7   :  { %199 = shalt.err (!%p196_p9)
}
  0xc8   :  { %119 = dma.vmem_to_hbm [thread:$0]  %s114_s3, 64, %s301_s5, [#allocation5], %s207_s28, %s207_s28, %s208_s29  }
  0xc9   :  { %204 = dma.done.wait [#allocation5], 64  }
  0xca   :  { %205 = vsyncadd [#allocation5], 4294967232 }
  0xcb   :  { %123 = vsyncpa [#allocation4], 1 }
  0xcc   :  { %124 = vsyncpa [#allocation7], 1 }
  0xcd   :  { %125 = vsyncpa [#allocation5], 1 }

</bundles_post_ra>
